<compile_context>
chip_gen: v7x
topology: tpu7x:2x2x1
jax: 0.10.0
libtpu: 0.0.40
codegen_flags: <defaults>
</compile_context>

<pallas_src>
import functools
import math

import jax
import jax.numpy as jnp
from jax.experimental import pallas as pl
from jax.experimental.pallas import tpu as pltpu


# Exactly representable in bf16/f32; pad-to-pad distance is exactly 0 and
# pad-to-real distances are ~2^120, so cauchy/gauss pad contributions vanish.
_PAD_OFFSET = 2.0 ** 60


def _dot_nt_bf16(x_bf16, y_bf16):
    """x @ y.T on the MXU with bf16 inputs and f32 accumulation."""
    return jax.lax.dot_general(
        x_bf16, y_bf16, (((1,), (1,)), ((), ())),
        preferred_element_type=jnp.float32)


def _round_up(x, m):
    return ((x + m - 1) // m) * m


def _vmem_capacity_bytes():
    try:
        return int(pltpu.get_tpu_info().vmem_capacity_bytes)
    except Exception:          # defensive default, safe on every chip (v7x = 64 MiB)
        return 64 * 1024 * 1024


def _vmem_estimate(tq, Bp, Dp):
    return (2 * 2 * tq * Dp * 4        # a/b f32 query tiles, double-buffered
            + 2 * 2 * Bp * Dp * 2      # resident bf16 keys (conservative x2)
            + 2 * 2 * 2 * Bp * 4       # squared-norm rows
            + 12 * tq * Bp * 4         # live (tq, Bp) f32 intermediates
            + 2 * Bp * 4               # m1 / s1 column accumulators
            + (4 << 20))               # slack


def _choose_tile(Bp, Dp, block_rows):
    cap = _vmem_capacity_bytes()
    budget = max(32 << 20, cap - (8 << 20))   # ~56 MiB on v7x, ~120 MiB on v5e/v6e
    if block_rows is not None:
        tq = int(block_rows)
        assert Bp % tq == 0, (Bp, tq)
    else:
        # v6e/v7x MXUs are 2x256^2 -> prefer 256-row tiles when they fit.
        # TODO(synk): keep tq=128 on v5e (4x128^2 MXU) once chip detection is wired.
        tq = 256 if (Bp % 256 == 0 and _vmem_estimate(256, Bp, Dp) <= budget) else 128
        tq = min(tq, Bp)
        while tq > 8 and _vmem_estimate(tq, Bp, Dp) > budget:
            tq //= 2
    vmem_limit = int(min(budget, max(32 << 20, _vmem_estimate(tq, Bp, Dp))))
    return tq, vmem_limit


def _make_kernel(metric, temp, B, Bp, Dp, tq, num_tiles, exaggeration=1.0):
    inv_temp = 1.0 / float(temp)
    t2 = float(temp) * float(temp)
    n_pad = Bp - B
    # Static shift keeping exp() in f32 range for extreme temperatures; it is
    # exactly 0 (and folds away) for any sane temperature, which is what lets
    # the cosine path drop online max tracking entirely.
    shift = max(0.0, inv_temp - 30.0) if metric == "cosine" else 0.0
    # Exact contribution of the zero pad rows/columns to the cosine sums.
    pad_term = 2.0 * n_pad * math.exp(-shift)

    def kernel(a_ref, b_ref, ka_ref, kb_ref, n2_ref, o_ref,
               m1_ref, s1_ref, acc_ref):
        t = pl.program_id(0)

        # ---------------- one-time init of the streaming accumulators
        @pl.when(t == 0)
        def _init():
            m1_ref[...] = jnp.full((1, Bp), -jnp.inf, jnp.float32)
            s1_ref[...] = jnp.zeros((1, Bp), jnp.float32)
            acc_ref[0] = 0.0     # alignment sum
            acc_ref[1] = 0.0     # row logsumexp (lse2) sum

        # ---------------- per-tile work
        r0 = pl.multiple_of(t * tq, tq)
        a_t = a_ref[...]                      # (tq, Dp) f32 query rows
        b_t = b_ref[...]
        qa = ka_ref[pl.ds(r0, tq), :]         # (tq, Dp) bf16 (reuse the key cache)
        qb = kb_ref[pl.ds(r0, tq), :]
        ka = ka_ref[...]                      # (Bp, Dp) bf16 keys, resident
        kb = kb_ref[...]

        rows = r0 + jax.lax.broadcasted_iota(jnp.int32, (tq, Bp), 0)
        cols = jax.lax.broadcasted_iota(jnp.int32, (tq, Bp), 1)
        on_diag = rows == cols
        row_valid = (r0 + jax.lax.broadcasted_iota(jnp.int32, (tq, 1), 0)) < B

        if metric == "cosine":
            neg_inf_diag = jnp.where(on_diag, -jnp.inf, 0.0).astype(jnp.float32)
            caa = _dot_nt_bf16(qa, ka) * inv_temp + neg_inf_diag
            cab = _dot_nt_bf16(qa, kb) * inv_temp
            cbb = _dot_nt_bf16(qb, kb) * inv_temp + neg_inf_diag
            if shift != 0.0:
                caa = caa - shift
                cab = cab - shift
                cbb = cbb - shift
            # exactly one exp per block; p_ab feeds BOTH row and column sums
            p_aa = jnp.exp(caa)
            p_ab = jnp.exp(cab)
            p_bb = jnp.exp(cbb)

            # alignment diagonal: exact f32 dot of the normalized rows (VPU)
            diag = jnp.sum(a_t * b_t, axis=1, keepdims=True) * inv_temp
            acc_ref[0] += jnp.sum(jnp.where(row_valid, diag, 0.0))

            # row LSE (complete within the tile); pad columns contribute the
            # exact constant pad_term, which is removed here.
            s2 = (jnp.sum(p_aa, axis=1, keepdims=True)
                  + jnp.sum(p_ab, axis=1, keepdims=True) - pad_term)
            acc_ref[1] += jnp.sum(jnp.where(row_valid, jnp.log(s2), 0.0))

            # streamed column sums (bounded values -> no max tracking needed)
            s1_ref[...] += (jnp.sum(p_ab, axis=0, keepdims=True)
                            + jnp.sum(p_bb, axis=0, keepdims=True))

        else:
            n2a_row = n2_ref[0:1, :]                              # (1, Bp)
            n2b_row = n2_ref[1:2, :]
            n2a_t = jnp.sum(a_t * a_t, axis=1, keepdims=True)     # (tq, 1)
            n2b_t = jnp.sum(b_t * b_t, axis=1, keepdims=True)

            d_aa = jnp.maximum(n2a_t + n2a_row - 2.0 * _dot_nt_bf16(qa, ka), 0.0)
            d_ab = jnp.maximum(n2a_t + n2b_row - 2.0 * _dot_nt_bf16(qa, kb), 0.0)
            d_bb = jnp.maximum(n2b_t + n2b_row - 2.0 * _dot_nt_bf16(qb, kb), 0.0)

            # exact f32 diagonal distance on the VPU (tq*Dp ops, not tq*Bp)
            diff = a_t - b_t
            d_diag = jnp.sum(diff * diff, axis=1, keepdims=True)

            if metric == "cauchy":
                keep = jnp.where(on_diag, 0.0, 1.0).astype(jnp.float32)
                sim_aa = pl.reciprocal(t2 * d_aa + 1.0, approx=True) * keep
                sim_ab = pl.reciprocal(t2 * d_ab + 1.0, approx=True)
                sim_bb = pl.reciprocal(t2 * d_bb + 1.0, approx=True) * keep

                align = -jnp.log(t2 * d_diag + 1.0)
                acc_ref[0] += jnp.sum(jnp.where(row_valid, align, 0.0))

                s2 = (jnp.sum(sim_aa, axis=1, keepdims=True)
                      + jnp.sum(sim_ab, axis=1, keepdims=True))
                acc_ref[1] += jnp.sum(jnp.where(row_valid, jnp.log(s2), 0.0))

                s1_ref[...] += (jnp.sum(sim_ab, axis=0, keepdims=True)
                                + jnp.sum(sim_bb, axis=0, keepdims=True))
            else:  # gauss: unbounded logits -> keep the streaming max shift
                neg_inf_diag = jnp.where(on_diag, -jnp.inf, 0.0).astype(jnp.float32)
                sim_aa = -(t2 * d_aa) + neg_inf_diag
                sim_ab = -(t2 * d_ab)
                sim_bb = -(t2 * d_bb) + neg_inf_diag

                acc_ref[0] += jnp.sum(jnp.where(row_valid, -(t2 * d_diag), 0.0))

                m2 = jnp.maximum(jnp.max(sim_aa, axis=1, keepdims=True),
                                 jnp.max(sim_ab, axis=1, keepdims=True))
                s2 = (jnp.sum(jnp.exp(sim_aa - m2), axis=1, keepdims=True)
                      + jnp.sum(jnp.exp(sim_ab - m2), axis=1, keepdims=True))
                acc_ref[1] += jnp.sum(jnp.where(row_valid, jnp.log(s2) + m2, 0.0))

                mt = jnp.maximum(jnp.max(sim_ab, axis=0, keepdims=True),
                                 jnp.max(sim_bb, axis=0, keepdims=True))
                st = (jnp.sum(jnp.exp(sim_ab - mt), axis=0, keepdims=True)
                      + jnp.sum(jnp.exp(sim_bb - mt), axis=0, keepdims=True))
                m_old = m1_ref[...]
                m_new = jnp.maximum(m_old, mt)
                s1_ref[...] = (s1_ref[...] * jnp.exp(m_old - m_new)
                               + st * jnp.exp(mt - m_new))
                m1_ref[...] = m_new

        # ---------------- finalize on the last tile
        @pl.when(t == num_tiles - 1)
        def _finalize():
            col_valid = jax.lax.broadcasted_iota(jnp.int32, (1, Bp), 1) < B
            s1 = s1_ref[...]
            if metric == "cosine":
                lse1 = jnp.log(s1 - pad_term)
            elif metric == "cauchy":
                lse1 = jnp.log(s1)
            else:
                lse1 = jnp.log(s1) + m1_ref[...]
            lse1_mean = jnp.sum(jnp.where(col_valid, lse1, 0.0)) / B
            lse2_mean = acc_ref[1] / B
            align_mean = acc_ref[0] / B
            if shift != 0.0:
                lse1_mean = lse1_mean + shift
                lse2_mean = lse2_mean + shift
            raw_uniformity = lse1_mean + lse2_mean
            loss = -(exaggeration * align_mean - 0.5 * raw_uniformity)
            o_ref[0, 0] = loss

    return kernel


@functools.partial(jax.jit, static_argnames=("metric", "temp", "block_rows"))
def infonce_loss(hidden, idx=None, *, metric="cosine", temp=0.5, block_rows=None):
    """Pallas TPU equivalent of InfoNCELoss(metric, temp)(hidden, idx)."""
    del idx                                   # unused, matches the PyTorch module
    if metric not in ("cosine", "cauchy", "gauss"):
        raise ValueError(f"Unknown metric = {metric!r} for InfoNCE loss")
    n, d = hidden.shape
    B = n // 2
    a = hidden[:B].astype(jnp.float32)
    b = hidden[B:2 * B].astype(jnp.float32)

    # Lane-dense padding: features -> multiple of 128 (zeros, exact), batch ->
    # multiple of 128 with neutral rows (corrected / vanishing contributions).
    Dp = max(128, _round_up(d, 128))
    Bp = max(128, _round_up(B, 128))
    n_pad = Bp - B

    # InfoNCELoss only forwards `temp` to the cosine variant; cauchy / gauss
    # use their defaults (temperature = 1, exaggeration = 1).
    eff_temp = float(temp) if metric == "cosine" else 1.0

    a = jnp.pad(a, ((0, 0), (0, Dp - d)))
    b = jnp.pad(b, ((0, 0), (0, Dp - d)))

    if metric == "cosine":
        # Normalize once in f32 in the wrapper; keys are the same rows in bf16.
        a = a / jnp.maximum(jnp.sqrt(jnp.sum(a * a, axis=1, keepdims=True)), 1e-12)
        b = b / jnp.maximum(jnp.sqrt(jnp.sum(b * b, axis=1, keepdims=True)), 1e-12)
        # TODO(synk): reg_coef / reg_radius penalty is identically zero here
        # because InfoNCELoss builds InfoNCECosine with the default reg_coef=0.

    if n_pad:
        if metric == "cosine":
            pad_rows = jnp.zeros((n_pad, Dp), jnp.float32)
        else:
            pad_rows = jnp.zeros((n_pad, Dp), jnp.float32).at[:, 0].set(_PAD_OFFSET)
        a_p = jnp.concatenate([a, pad_rows], axis=0)
        b_p = jnp.concatenate([b, pad_rows], axis=0)
    else:
        a_p, b_p = a, b

    ka = a_p.astype(jnp.bfloat16)                       # resident bf16 keys
    kb = b_p.astype(jnp.bfloat16)
    n2 = jnp.stack([jnp.sum(a_p * a_p, axis=1),         # (2, Bp) squared norms
                    jnp.sum(b_p * b_p, axis=1)]).astype(jnp.float32)

    tq, vmem_limit = _choose_tile(Bp, Dp, block_rows)
    num_tiles = Bp // tq
    kernel = _make_kernel(metric, eff_temp, B, Bp, Dp, tq, num_tiles)

    cost = pl.CostEstimate(
        flops=2 * 3 * Bp * Bp * Dp,
        transcendentals=4 * Bp * Bp,
        bytes_accessed=2 * Bp * Dp * 4 + 2 * Bp * Dp * 2 + 2 * Bp * 4 + 4,
    )

    out = pl.pallas_call(
        kernel,
        out_shape=jax.ShapeDtypeStruct((1, 1), jnp.float32),
        grid_spec=pltpu.PrefetchScalarGridSpec(
            num_scalar_prefetch=0,
            grid=(num_tiles,),
            in_specs=[
                pl.BlockSpec((tq, Dp), lambda t: (t, 0)),   # a query rows (f32)
                pl.BlockSpec((tq, Dp), lambda t: (t, 0)),   # b query rows (f32)
                pl.BlockSpec((Bp, Dp), lambda t: (0, 0)),   # bf16 keys a, resident
                pl.BlockSpec((Bp, Dp), lambda t: (0, 0)),   # bf16 keys b, resident
                pl.BlockSpec((2, Bp), lambda t: (0, 0)),    # squared-norm rows
            ],
            out_specs=pl.BlockSpec((1, 1), lambda t: (0, 0),
                                   memory_space=pltpu.MemorySpace.SMEM),
            scratch_shapes=[
                pltpu.VMEM((1, Bp), jnp.float32),   # m1: streaming column max (gauss)
                pltpu.VMEM((1, Bp), jnp.float32),   # s1: streaming column sum
                pltpu.SMEM((4,), jnp.float32),      # [align_sum, lse2_sum, -, -]
            ]),
        compiler_params=pltpu.CompilerParams(
            dimension_semantics=("arbitrary",),
            vmem_limit_bytes=vmem_limit),
        cost_estimate=cost,
    )(a_p, b_p, ka, kb, n2)
    return out[0, 0]


# ---------------- pure-JAX reference (sanity checking only) ----------------
def _ref_loss(hidden, metric, temp):
    B = hidden.shape[0] // 2
    a, b = hidden[:B], hidden[B:2 * B]
    eye = jnp.eye(B, dtype=bool)
    eff_temp = temp if metric == "cosine" else 1.0

    if metric == "cosine":
        an = a / jnp.maximum(jnp.linalg.norm(a, axis=1, keepdims=True), 1e-12)
        bn = b / jnp.maximum(jnp.linalg.norm(b, axis=1, keepdims=True), 1e-12)
        caa = an @ an.T / eff_temp
        cbb = bn @ bn.T / eff_temp
        cab = an @ bn.T / eff_temp
        ta = jnp.trace(cab) / B
        caa = jnp.where(eye, -jnp.inf, caa)
        cbb = jnp.where(eye, -jnp.inf, cbb)
        l1 = jax.scipy.special.logsumexp(jnp.hstack((cab.T, cbb)), axis=1).mean()
        l2 = jax.scipy.special.logsumexp(jnp.hstack((caa, cab)), axis=1).mean()
        return -(ta - (l1 + l2) / 2.0)   # reg_coef == 0 -> no penalty

    def sq(x, y):
        d = (jnp.sum(x * x, 1, keepdims=True) + jnp.sum(y * y, 1) - 2.0 * x @ y.T)
        return jnp.maximum(d, 0.0)

    t2 = eff_temp * eff_temp
    daa, dbb, dab = sq(a, a), sq(b, b), sq(a, b)
    if metric == "cauchy":
        saa = 1.0 / (t2 * daa + 1.0)
        sbb = 1.0 / (t2 * dbb + 1.0)
        sab = 1.0 / (t2 * dab + 1.0)
        ta = jnp.mean(jnp.log(jnp.diagonal(sab)))
        saa = jnp.where(eye, 0.0, saa)
        sbb = jnp.where(eye, 0.0, sbb)
        l1 = jnp.mean(jnp.log(jnp.hstack((sab.T, sbb)).sum(1)))
        l2 = jnp.mean(jnp.log(jnp.hstack((saa, sab)).sum(1)))
        return -(1.0 * ta - (l1 + l2) / 2.0)
    else:  # gauss
        saa, sbb, sab = -(t2 * daa), -(t2 * dbb), -(t2 * dab)
        ta = jnp.trace(sab) / B
        saa = jnp.where(eye, -jnp.inf, saa)
        sbb = jnp.where(eye, -jnp.inf, sbb)
        l1 = jax.scipy.special.logsumexp(jnp.hstack((sab.T, sbb)), axis=1).mean()
        l2 = jax.scipy.special.logsumexp(jnp.hstack((saa, sab)), axis=1).mean()
        return -(ta - (l1 + l2) / 2.0)


if __name__ == "__main__":
    key = jax.random.PRNGKey(0)
    B, D = 16, 32
    hidden = jax.random.normal(key, (2 * B, D), dtype=jnp.float32)  # [2B, D]
    idx = jnp.arange(2 * B, dtype=jnp.int32)                        # unused by the loss

    for metric, temp in (("cosine", 0.5), ("cauchy", 1.0), ("gauss", 1.0)):
        ref = _ref_loss(hidden, metric, temp)
        # block_rows=32 exercises the multi-step streaming path; None = auto tile.
        for br in (32, None):
            loss = infonce_loss(hidden, idx, metric=metric, temp=temp, block_rows=br)
            loss = jax.block_until_ready(loss)
            assert bool(jnp.isfinite(loss)), (metric, br, float(loss))
            assert jnp.allclose(loss, ref, rtol=2e-2, atol=2e-2), (
                metric, br, float(loss), float(ref))

    print("KERNEL_OK")
</pallas_src>

<mosaic_0001>
module attributes {stable_mosaic.version = 11 : i64} {
  func.func @kernel(%arg0: i32, %arg1: memref<32x128xf32, #tpu.memory_space<vmem>>, %arg2: memref<32x128xf32, #tpu.memory_space<vmem>>, %arg3: memref<128x128xbf16, #tpu.memory_space<vmem>>, %arg4: memref<128x128xbf16, #tpu.memory_space<vmem>>, %arg5: memref<2x128xf32, #tpu.memory_space<vmem>>, %arg6: memref<1x1xf32, #tpu.memory_space<smem>>, %arg7: memref<1x128xf32, #tpu.memory_space<vmem>>, %arg8: memref<1x128xf32, #tpu.memory_space<vmem>>, %arg9: memref<4xf32, #tpu.memory_space<smem>>) attributes {dimension_semantics = [#tpu.dimension_semantics<arbitrary>], iteration_bounds = array<i64: 4>, scalar_prefetch = 0 : i64, scratch_operands = 3 : i64, tpu.core_type = #tpu.core_type<tc>, window_params = [{transform_indices = @transform_0, window_bounds = array<i64: 32, 128>}, {transform_indices = @transform_1, window_bounds = array<i64: 32, 128>}, {pipeline_mode = #tpu.pipeline_mode<synchronous>, transform_indices = @transform_2, window_bounds = array<i64: 128, 128>}, {pipeline_mode = #tpu.pipeline_mode<synchronous>, transform_indices = @transform_3, window_bounds = array<i64: 128, 128>}, {pipeline_mode = #tpu.pipeline_mode<synchronous>, transform_indices = @transform_4, window_bounds = array<i64: 2, 128>}, {transform_indices = @transform_5, window_bounds = array<i64: 1, 1>}]} {
    %c0_i32 = arith.constant 0 : i32
    %0 = arith.cmpi eq, %arg0, %c0_i32 : i32
    %1 = arith.extui %0 : i1 to i32
    %c0_i32_0 = arith.constant 0 : i32
    %2 = arith.cmpi ne, %1, %c0_i32_0 : i32
    scf.if %2 {
      %cst_36 = arith.constant 0xFF800000 : f32
      %82 = vector.broadcast %cst_36 : f32 to vector<1x128xf32>
      %c0_37 = arith.constant 0 : index
      %c0_38 = arith.constant 0 : index
      %83 = vector.load %arg7[%c0_37, %c0_38] : memref<1x128xf32, #tpu.memory_space<vmem>>, vector<1x128xf32>
      tpu.vector_store %arg7[%c0_37, %c0_38], %82 {strides = array<i32>} : memref<1x128xf32, #tpu.memory_space<vmem>>, vector<1x128xf32>,
      %cst_39 = arith.constant 0.000000e+00 : f32
      %84 = vector.broadcast %cst_39 : f32 to vector<1x128xf32>
      %c0_40 = arith.constant 0 : index
      %c0_41 = arith.constant 0 : index
      %85 = vector.load %arg8[%c0_40, %c0_41] : memref<1x128xf32, #tpu.memory_space<vmem>>, vector<1x128xf32>
      tpu.vector_store %arg8[%c0_40, %c0_41], %84 {strides = array<i32>} : memref<1x128xf32, #tpu.memory_space<vmem>>, vector<1x128xf32>,
      %cst_42 = arith.constant 0.000000e+00 : f32
      %c0_43 = arith.constant 0 : index
      %86 = memref.load %arg9[%c0_43] : memref<4xf32, #tpu.memory_space<smem>>
      memref.store %cst_42, %arg9[%c0_43] : memref<4xf32, #tpu.memory_space<smem>>
      %cst_44 = arith.constant 0.000000e+00 : f32
      %c1_45 = arith.constant 1 : index
      %87 = memref.load %arg9[%c1_45] : memref<4xf32, #tpu.memory_space<smem>>
      memref.store %cst_44, %arg9[%c1_45] : memref<4xf32, #tpu.memory_space<smem>>
    } else {
    }
    %c32_i32 = arith.constant 32 : i32
    %3 = arith.muli %arg0, %c32_i32 : i32
    %4 = tpu.assume_multiple %3, 32 : i32
    %c0 = arith.constant 0 : index
    %c0_1 = arith.constant 0 : index
    %5 = vector.load %arg1[%c0, %c0_1] : memref<32x128xf32, #tpu.memory_space<vmem>>, vector<32x128xf32>
    %c0_2 = arith.constant 0 : index
    %c0_3 = arith.constant 0 : index
    %6 = vector.load %arg2[%c0_2, %c0_3] : memref<32x128xf32, #tpu.memory_space<vmem>>, vector<32x128xf32>
    %7 = arith.index_cast %4 : i32 to index
    %c0_4 = arith.constant 0 : index
    %8 = vector.load %arg3[%7, %c0_4] : memref<128x128xbf16, #tpu.memory_space<vmem>>, vector<32x128xbf16>
    %9 = arith.index_cast %4 : i32 to index
    %c0_5 = arith.constant 0 : index
    %10 = vector.load %arg4[%9, %c0_5] : memref<128x128xbf16, #tpu.memory_space<vmem>>, vector<32x128xbf16>
    %c0_6 = arith.constant 0 : index
    %c0_7 = arith.constant 0 : index
    %11 = vector.load %arg3[%c0_6, %c0_7] : memref<128x128xbf16, #tpu.memory_space<vmem>>, vector<128x128xbf16>
    %c0_8 = arith.constant 0 : index
    %c0_9 = arith.constant 0 : index
    %12 = vector.load %arg4[%c0_8, %c0_9] : memref<128x128xbf16, #tpu.memory_space<vmem>>, vector<128x128xbf16>
    %13 = tpu.iota {dimensions = array<i32: 0>} : vector<32x128xi32>
    %14 = vector.broadcast %4 : i32 to vector<32x128xi32>
    %15 = arith.addi %14, %13 : vector<32x128xi32>
    %16 = tpu.iota {dimensions = array<i32: 1>} : vector<32x128xi32>
    %17 = arith.cmpi eq, %15, %16 : vector<32x128xi32>
    %18 = tpu.iota {dimensions = array<i32: 0>} : vector<32x1xi32>
    %19 = vector.broadcast %4 : i32 to vector<32x1xi32>
    %20 = arith.addi %19, %18 : vector<32x1xi32>
    %c16_i32 = arith.constant 16 : i32
    %21 = vector.broadcast %c16_i32 : i32 to vector<32x1xi32>
    %22 = arith.cmpi slt, %20, %21 : vector<32x1xi32>
    %cst = arith.constant 0xFF800000 : f32
    %cst_10 = arith.constant 0.000000e+00 : f32
    %23 = vector.broadcast %cst : f32 to vector<32x128xf32>
    %24 = vector.broadcast %cst_10 : f32 to vector<32x128xf32>
    %25 = arith.select %17, %23, %24 : vector<32x128xi1>, vector<32x128xf32>
    %cst_11 = arith.constant dense<0.000000e+00> : vector<32x128xf32>
    %26 = tpu.matmul %8, %11, %cst_11 {dimension_numbers = #tpu.dot_dimension_numbers<[1], [1], [0], [0], [0, 0, 1, 0], [], []>} : vector<32x128xbf16>, vector<128x128xbf16>, vector<32x128xf32> -> vector<32x128xf32>
    %cst_12 = arith.constant 2.000000e+00 : f32
    %27 = vector.broadcast %cst_12 : f32 to vector<32x128xf32>
    %28 = arith.mulf %26, %27 : vector<32x128xf32>
    %29 = arith.addf %28, %25 : vector<32x128xf32>
    %cst_13 = arith.constant dense<0.000000e+00> : vector<32x128xf32>
    %30 = tpu.matmul %8, %12, %cst_13 {dimension_numbers = #tpu.dot_dimension_numbers<[1], [1], [0], [0], [0, 0, 1, 0], [], []>} : vector<32x128xbf16>, vector<128x128xbf16>, vector<32x128xf32> -> vector<32x128xf32>
    %cst_14 = arith.constant 2.000000e+00 : f32
    %31 = vector.broadcast %cst_14 : f32 to vector<32x128xf32>
    %32 = arith.mulf %30, %31 : vector<32x128xf32>
    %cst_15 = arith.constant dense<0.000000e+00> : vector<32x128xf32>
    %33 = tpu.matmul %10, %12, %cst_15 {dimension_numbers = #tpu.dot_dimension_numbers<[1], [1], [0], [0], [0, 0, 1, 0], [], []>} : vector<32x128xbf16>, vector<128x128xbf16>, vector<32x128xf32> -> vector<32x128xf32>
    %cst_16 = arith.constant 2.000000e+00 : f32
    %34 = vector.broadcast %cst_16 : f32 to vector<32x128xf32>
    %35 = arith.mulf %33, %34 : vector<32x128xf32>
    %36 = arith.addf %35, %25 : vector<32x128xf32>
    %37 = math.exp %29 : vector<32x128xf32>
    %38 = math.exp %32 : vector<32x128xf32>
    %39 = math.exp %36 : vector<32x128xf32>
    %40 = arith.mulf %5, %6 : vector<32x128xf32>
    %cst_17 = arith.constant dense<0.000000e+00> : vector<32xf32>
    %41 = vector.multi_reduction <add>, %40, %cst_17 [1] : vector<32x128xf32> to vector<32xf32>
    %42 = vector.shape_cast %41 : vector<32xf32> to vector<32x1xf32>
    %cst_18 = arith.constant 2.000000e+00 : f32
    %43 = vector.broadcast %cst_18 : f32 to vector<32x1xf32>
    %44 = arith.mulf %42, %43 : vector<32x1xf32>
    %c0_19 = arith.constant 0 : index
    %45 = memref.load %arg9[%c0_19] : memref<4xf32, #tpu.memory_space<smem>>
    %cst_20 = arith.constant 0.000000e+00 : f32
    %46 = vector.broadcast %cst_20 : f32 to vector<32x1xf32>
    %47 = arith.select %22, %44, %46 : vector<32x1xi1>, vector<32x1xf32>
    %48 = vector.shape_cast %47 : vector<32x1xf32> to vector<1x32x1xf32>
    %cst_21 = arith.constant dense<0.000000e+00> : vector<1xf32>
    %49 = vector.multi_reduction <add>, %48, %cst_21 [1, 2] : vector<1x32x1xf32> to vector<1xf32>
    %50 = vector.shape_cast %49 : vector<1xf32> to vector<1x1x1xf32>
    %51 = vector.extract %50[0, 0, 0] : f32 from vector<1x1x1xf32>
    %52 = arith.addf %45, %51 : f32
    %c0_22 = arith.constant 0 : index
    %53 = memref.load %arg9[%c0_22] : memref<4xf32, #tpu.memory_space<smem>>
    memref.store %52, %arg9[%c0_22] : memref<4xf32, #tpu.memory_space<smem>>
    %cst_23 = arith.constant dense<0.000000e+00> : vector<32xf32>
    %54 = vector.multi_reduction <add>, %37, %cst_23 [1] : vector<32x128xf32> to vector<32xf32>
    %55 = vector.shape_cast %54 : vector<32xf32> to vector<32x1xf32>
    %cst_24 = arith.constant dense<0.000000e+00> : vector<32xf32>
    %56 = vector.multi_reduction <add>, %38, %cst_24 [1] : vector<32x128xf32> to vector<32xf32>
    %57 = vector.shape_cast %56 : vector<32xf32> to vector<32x1xf32>
    %58 = arith.addf %55, %57 : vector<32x1xf32>
    %cst_25 = arith.constant 2.240000e+02 : f32
    %59 = vector.broadcast %cst_25 : f32 to vector<32x1xf32>
    %60 = arith.subf %58, %59 : vector<32x1xf32>
    %c1 = arith.constant 1 : index
    %61 = memref.load %arg9[%c1] : memref<4xf32, #tpu.memory_space<smem>>
    %62 = math.log %60 : vector<32x1xf32>
    %cst_26 = arith.constant 0.000000e+00 : f32
    %63 = vector.broadcast %cst_26 : f32 to vector<32x1xf32>
    %64 = arith.select %22, %62, %63 : vector<32x1xi1>, vector<32x1xf32>
    %65 = vector.shape_cast %64 : vector<32x1xf32> to vector<1x32x1xf32>
    %cst_27 = arith.constant dense<0.000000e+00> : vector<1xf32>
    %66 = vector.multi_reduction <add>, %65, %cst_27 [1, 2] : vector<1x32x1xf32> to vector<1xf32>
    %67 = vector.shape_cast %66 : vector<1xf32> to vector<1x1x1xf32>
    %68 = vector.extract %67[0, 0, 0] : f32 from vector<1x1x1xf32>
    %69 = arith.addf %61, %68 : f32
    %c1_28 = arith.constant 1 : index
    %70 = memref.load %arg9[%c1_28] : memref<4xf32, #tpu.memory_space<smem>>
    memref.store %69, %arg9[%c1_28] : memref<4xf32, #tpu.memory_space<smem>>
    %c0_29 = arith.constant 0 : index
    %c0_30 = arith.constant 0 : index
    %71 = vector.load %arg8[%c0_29, %c0_30] : memref<1x128xf32, #tpu.memory_space<vmem>>, vector<1x128xf32>
    %cst_31 = arith.constant dense<0.000000e+00> : vector<128xf32>
    %72 = vector.multi_reduction <add>, %38, %cst_31 [0] : vector<32x128xf32> to vector<128xf32>
    %73 = vector.shape_cast %72 : vector<128xf32> to vector<1x128xf32>
    %cst_32 = arith.constant dense<0.000000e+00> : vector<128xf32>
    %74 = vector.multi_reduction <add>, %39, %cst_32 [0] : vector<32x128xf32> to vector<128xf32>
    %75 = vector.shape_cast %74 : vector<128xf32> to vector<1x128xf32>
    %76 = arith.addf %73, %75 : vector<1x128xf32>
    %77 = arith.addf %71, %76 : vector<1x128xf32>
    %c0_33 = arith.constant 0 : index
    %c0_34 = arith.constant 0 : index
    %78 = vector.load %arg8[%c0_33, %c0_34] : memref<1x128xf32, #tpu.memory_space<vmem>>, vector<1x128xf32>
    tpu.vector_store %arg8[%c0_33, %c0_34], %77 {strides = array<i32>} : memref<1x128xf32, #tpu.memory_space<vmem>>, vector<1x128xf32>,
    %c3_i32 = arith.constant 3 : i32
    %79 = arith.cmpi eq, %arg0, %c3_i32 : i32
    %80 = arith.extui %79 : i1 to i32
    %c0_i32_35 = arith.constant 0 : i32
    %81 = arith.cmpi ne, %80, %c0_i32_35 : i32
    scf.if %81 {
      %82 = tpu.iota {dimensions = array<i32: 1>} : vector<1x128xi32>
      %c16_i32_36 = arith.constant 16 : i32
      %83 = vector.broadcast %c16_i32_36 : i32 to vector<1x128xi32>
      %84 = arith.cmpi slt, %82, %83 : vector<1x128xi32>
      %c0_37 = arith.constant 0 : index
      %c0_38 = arith.constant 0 : index
      %85 = vector.load %arg8[%c0_37, %c0_38] : memref<1x128xf32, #tpu.memory_space<vmem>>, vector<1x128xf32>
      %cst_39 = arith.constant 2.240000e+02 : f32
      %86 = vector.broadcast %cst_39 : f32 to vector<1x128xf32>
      %87 = arith.subf %85, %86 : vector<1x128xf32>
      %88 = math.log %87 : vector<1x128xf32>
      %cst_40 = arith.constant 0.000000e+00 : f32
      %89 = vector.broadcast %cst_40 : f32 to vector<1x128xf32>
      %90 = arith.select %84, %88, %89 : vector<1x128xi1>, vector<1x128xf32>
      %91 = vector.shape_cast %90 : vector<1x128xf32> to vector<1x1x128xf32>
      %cst_41 = arith.constant dense<0.000000e+00> : vector<1xf32>
      %92 = vector.multi_reduction <add>, %91, %cst_41 [1, 2] : vector<1x1x128xf32> to vector<1xf32>
      %93 = vector.shape_cast %92 : vector<1xf32> to vector<1x1x1xf32>
      %94 = vector.extract %93[0, 0, 0] : f32 from vector<1x1x1xf32>
      %cst_42 = arith.constant 1.600000e+01 : f32
      %95 = arith.divf %94, %cst_42 : f32
      %c1_43 = arith.constant 1 : index
      %96 = memref.load %arg9[%c1_43] : memref<4xf32, #tpu.memory_space<smem>>
      %cst_44 = arith.constant 1.600000e+01 : f32
      %97 = arith.divf %96, %cst_44 : f32
      %c0_45 = arith.constant 0 : index
      %98 = memref.load %arg9[%c0_45] : memref<4xf32, #tpu.memory_space<smem>>
      %cst_46 = arith.constant 1.600000e+01 : f32
      %99 = arith.divf %98, %cst_46 : f32
      %100 = arith.addf %95, %97 : f32
      %cst_47 = arith.constant 1.000000e+00 : f32
      %101 = arith.mulf %cst_47, %99 : f32
      %cst_48 = arith.constant 5.000000e-01 : f32
      %102 = arith.mulf %cst_48, %100 : f32
      %103 = arith.subf %101, %102 : f32
      %cst_49 = arith.constant 0.000000e+00 : f32
      %104 = arith.subf %cst_49, %103 : f32
      %c0_50 = arith.constant 0 : index
      %c0_51 = arith.constant 0 : index
      %105 = memref.load %arg6[%c0_50, %c0_51] : memref<1x1xf32, #tpu.memory_space<smem>>
      memref.store %104, %arg6[%c0_50, %c0_51] : memref<1x1xf32, #tpu.memory_space<smem>>
    } else {
    }
    return
  }
  func.func @transform_0(%arg0: i32) -> (i32, i32) {
    %c0_i32 = arith.constant 0 : i32
    %c0_i32_0 = arith.constant 0 : i32
    return %arg0, %c0_i32 : i32, i32
  }
  func.func @transform_1(%arg0: i32) -> (i32, i32) {
    %c0_i32 = arith.constant 0 : i32
    %c0_i32_0 = arith.constant 0 : i32
    return %arg0, %c0_i32 : i32, i32
  }
  func.func @transform_2(%arg0: i32) -> (i32, i32) {
    %c0_i32 = arith.constant 0 : i32
    %c0_i32_0 = arith.constant 0 : i32
    %c0_i32_1 = arith.constant 0 : i32
    return %c0_i32, %c0_i32_0 : i32, i32
  }
  func.func @transform_3(%arg0: i32) -> (i32, i32) {
    %c0_i32 = arith.constant 0 : i32
    %c0_i32_0 = arith.constant 0 : i32
    %c0_i32_1 = arith.constant 0 : i32
    return %c0_i32, %c0_i32_0 : i32, i32
  }
  func.func @transform_4(%arg0: i32) -> (i32, i32) {
    %c0_i32 = arith.constant 0 : i32
    %c0_i32_0 = arith.constant 0 : i32
    %c0_i32_1 = arith.constant 0 : i32
    return %c0_i32, %c0_i32_0 : i32, i32
  }
  func.func @transform_5(%arg0: i32) -> (i32, i32) {
    %c0_i32 = arith.constant 0 : i32
    %c0_i32_0 = arith.constant 0 : i32
    %c0_i32_1 = arith.constant 0 : i32
    return %c0_i32, %c0_i32_0 : i32, i32
  }
}

</mosaic_0001>

<bundles_post_ra>
// kernel: infonce_loss.1
= control target key start
LH: loop header
LB: loop body
LE: loop exit
PB: predicated region body
PF: predicated region fallthrough
CT: control target
= control target key end

     0   :  { %10 = vsyncpa [#allocation6], 0  ;;  %s1125_s18 = smov 0   ;;  %s1294_s0 = inlined_call_operand.vmem [shape: f32[128,128], index: 0, kind: input, shape index: {}]   ;;  %s1295_s1 = inlined_call_operand.vmem [shape: f32[128,128], index: 1, kind: input, shape index: {}]   ;;  %s1296_s2 = inlined_call_operand.vmem [shape: bf16[128,128], index: 2, kind: input, shape index: {}]   ;;  %s1297_s3 = inlined_call_operand.vmem [shape: bf16[128,128], index: 3, kind: input, shape index: {}]   ;;  %s1298_s4 = inlined_call_operand.vmem [shape: f32[2,128], index: 4, kind: input, shape index: {}]   ;;  %s1299_s5 = inlined_call_operand.hbm [shape: f32[1,1], index: 5, kind: output, shape index: {}]  }
   0x1 LB: > { %s1131_s19 = sadd.s32 4294967295, %s1089_s18   ;;  %p857_p0 = scmp.ge.s32.totalorder %s1089_s18, 1  ;;  %s1089_s18 = sphi %s1125_s18, %s16_s18  }
   0x2   : > { %p195_p1 = scmp.lt.s32.totalorder %s1089_s18, 5 }
   0x4   : > { %p196_p2 = pnand %p857_p0, %p195_p1 }
   0x5   : > { %s858_s4 = sshll.u32 (!%p196_p2), %s1131_s19, 2  ;;  %p862_p4 = scmp.ne.s32.totalorder (!%p196_p2), %s1131_s19, 0 }
   0x6   : > { %199 = sbr.rel (%p196_p2) target bundleno = 731 (0x2db), region = 40  ;;  %p224_p3 = scmp.lt.s32.totalorder (!%p196_p2), %s858_s4, 15 }
   0xd   : > { %s1301_s4 = smov (!%p224_p3, %s858_s4), 15  ;;  %239 = sbr.rel (%p862_p4) target bundleno = 20 (0x14), region = 44 }
   0xe   : > { %s859_s20 = sshll.u32 %s1301_s4, 3  ;;  %v1091_v0 = vmov (!%p862_p4), 0.0   ;;  %s1092_s27 = smov (!%p862_p4), 0.0  }
   0xf   : > { %s1139_s23 = scalar_lea.vmem %s1294_s0, %s859_s20  ;;  %s1144_s26 = scalar_lea.vmem %s1295_s1, %s859_s20  ;;  %241 = vst [vmem:[#allocation3] sm:$0x1] (!%p862_p4), %v1091_v0 }
  0x10   : > { %243 = sst [smem:[#allocation4]] (!%p862_p4), %s1092_s27 }
  0x11   : > { %245 = sst [smem:[#allocation4 + $0x1]] (!%p862_p4), %s1092_s27 }
  0x14 PF: > { %v1013_v1 = vld [vmem:[%s1296_s2] sm:$0xff]   ;;  %v1015_v3 = vld [vmem:[%s1296_s2 + $0x8] sm:$0xff]   ;;  %s863_s11 = sshll.u32 %s1131_s19, 5  ;;  %v1017_v5 = vld [vmem:[%s1296_s2 + $0x10] sm:$0xff]   ;;  %v301_v21 = vlaneseq  ;;  %v1093_v33 = vmov 0.0   ;;  %vm657_vm6 = vcmask 7168  }
  0x15   : > { %v1014_v2 = vld [vmem:[%s1297_s3] sm:$0xff]   ;;  %928 = vmatprep.subr.bf16.mxu0 %v1013_v1  ;;  %v1016_v4 = vld [vmem:[%s1297_s3 + $0x8] sm:$0xff]   ;;  %s255_s12 = sshra.s32 %s863_s11, 3  ;;  %v1018_v6 = vld [vmem:[%s1297_s3 + $0x10] sm:$0xff]   ;;  %v306_v24 = vstv %s863_s11  ;;  %p891_p5 = scmp.ne.s32.totalorder %s1131_s19, 3 }
  0x16   : > { %948 = vmatprep.subr.bf16.mxu1 %v1014_v2  ;;  %929 = vmatpush3.bf16.xpose.msra.mxu0 %v1013_v1  ;;  %s864_s17 = sshll.u32 %s255_s12, 2  ;;  %v1019_v7 = vld [vmem:[%s1296_s2 + $0x18] sm:$0xff]   ;;  %v1021_v10 = vld [vmem:[%s1296_s2 + $0x20] sm:$0xff]   ;;  %v1023_v12 = vld [vmem:[%s1296_s2 + $0x28] sm:$0xff]   ;;  %v302_v22 = vshrl.u32 %v301_v21, 7  ;;  %v1216_v26 = vand.u32 127, %v301_v21 }
  0x17   : > { %949 = vmatpush3.bf16.xpose.msra.mxu1 %v1014_v2  ;;  %930 = vmatprep.subr.bf16.mxu0 %v1015_v3  ;;  %s1171_s21 = scalar_lea.vmem %s1296_s2, %s864_s17  ;;  %v1020_v9 = vld [vmem:[%s1297_s3 + $0x18] sm:$0xff]   ;;  %s1183_s30 = scalar_lea.vmem %s1297_s3, %s864_s17  ;;  %v1022_v11 = vld [vmem:[%s1297_s3 + $0x20] sm:$0xff]   ;;  %v1024_v13 = vld [vmem:[%s1297_s3 + $0x28] sm:$0xff]   ;;  %vm765_vm10 = vcmask (!%p891_p5), 1040384  }
  0x18   : > { %950 = vmatprep.subr.bf16.mxu1 %v1016_v4  ;;  %v1029_v8 = vld [vmem:[%s1171_s21] sm:$0xff]   ;;  %v1025_v14 = vld [vmem:[%s1296_s2 + $0x30] sm:$0xff]   ;;  %v1027_v16 = vld [vmem:[%s1296_s2 + $0x38] sm:$0xff]   ;;  %v304_v23 = vadd.s32 16, %v302_v22  ;;  %v1220_v27 = vadd.s32 %v306_v24, %v302_v22  ;;  %v303_v28 = vadd.s32 8, %v302_v22  ;;  %v305_v39 = vadd.s32 24, %v302_v22 }
  0x19   : > { %944 = vmatprep.mubr.bf16.mxu0 %v1029_v8  ;;  %964 = vmatprep.mubr.bf16.mxu1 %v1029_v8  ;;  %v1026_v15 = vld [vmem:[%s1297_s3 + $0x30] sm:$0xff]   ;;  %v1028_v17 = vld [vmem:[%s1297_s3 + $0x38] sm:$0xff]   ;;  %v1030_v18 = vld [vmem:[%s1171_s21 + $0x8] sm:$0xff]   ;;  %vm759_vm9 = vcmp.lt.s32.totalorder (!%p891_p5), %v1216_v26, 16 }
  0x1a   : > { %v1031_v19 = vld [vmem:[%s1183_s30] sm:$0xff]   ;;  %v1032_v20 = vld [vmem:[%s1183_s30 + $0x8] sm:$0xff]   ;;  %v1214_v25 = vadd.s32 %v306_v24, %v304_v23  ;;  %vm313_vm1 = vcmp.eq.s32.totalorder %v1220_v27, %v1216_v26  ;;  %v1226_v41 = vadd.s32 %v306_v24, %v303_v28  ;;  %v1231_v50 = vadd.s32 %v306_v24, %v305_v39  ;;  %v249_v21 = vld [vmem:[%s1139_s23 + $0x10] sm:$0xff] }
  0x1b   : > { %v1229_v48 = vsel %vm313_vm1, -inf, %v1093_v33  ;;  %v248_v8 = vld [vmem:[%s1139_s23 + $0x8] sm:$0xff]  ;;  %v253_v22 = vld [vmem:[%s1144_s26 + $0x10] sm:$0xff]  ;;  %vm317_vm5 = vcmp.lt.s32.totalorder %v1220_v27, 16 }
  0x1c   : > { %vm315_vm0 = vcmp.eq.s32.totalorder %v1214_v25, %v1216_v26  ;;  %vm314_vm2 = vcmp.eq.s32.totalorder %v1226_v41, %v1216_v26  ;;  %vm316_vm3 = vcmp.eq.s32.totalorder %v1231_v50, %v1216_v26  ;;  %v638_v23 = vmul.f32 %v253_v22, %v249_v21 }
  0x1d   : > { %v1222_v34 = vsel %vm315_vm0, -inf, %v1093_v33  ;;  %v1236_v56 = vsel %vm314_vm2, -inf, %v1093_v33  ;;  %v324_v61 = vsel %vm316_vm3, -inf, %v1093_v33  ;;  %vm318_vm4 = vcmp.lt.s32.totalorder %v1226_v41, 16 }
  0x1e   : > { %931 = vmatpush3.bf16.xpose.msra.mxu0 %v1015_v3  ;;  %vm320_vm7 = vcmp.lt.s32.totalorder %v1231_v50, 16  ;;  %vm319_vm8 = vcmp.lt.s32.totalorder %v1214_v25, 16 }
  0x1f   : > { %951 = vmatpush3.bf16.xpose.msra.mxu1 %v1016_v4  ;;  %932 = vmatprep.subr.bf16.mxu0 %v1017_v5 }
  0x20   : > { %952 = vmatprep.subr.bf16.mxu1 %v1018_v6 }
  0x26   : > { %933 = vmatpush3.bf16.xpose.msra.mxu0 %v1017_v5 }
  0x27   : > { %953 = vmatpush3.bf16.xpose.msra.mxu1 %v1018_v6  ;;  %934 = vmatprep.subr.bf16.mxu0 %v1019_v7 }
  0x28   : > { %954 = vmatprep.subr.bf16.mxu1 %v1020_v9 }
  0x2e   : > { %935 = vmatpush3.bf16.xpose.msra.mxu0 %v1019_v7 }
  0x2f   : > { %955 = vmatpush3.bf16.xpose.msra.mxu1 %v1020_v9  ;;  %936 = vmatprep.subr.bf16.mxu0 %v1021_v10 }
  0x30   : > { %956 = vmatprep.subr.bf16.mxu1 %v1022_v11 }
  0x36   : > { %937 = vmatpush3.bf16.xpose.msra.mxu0 %v1021_v10 }
  0x37   : > { %957 = vmatpush3.bf16.xpose.msra.mxu1 %v1022_v11  ;;  %938 = vmatprep.subr.bf16.mxu0 %v1023_v12 }
  0x38   : > { %958 = vmatprep.subr.bf16.mxu1 %v1024_v13 }
  0x3e   : > { %939 = vmatpush3.bf16.xpose.msra.mxu0 %v1023_v12 }
  0x3f   : > { %959 = vmatpush3.bf16.xpose.msra.mxu1 %v1024_v13  ;;  %940 = vmatprep.subr.bf16.mxu0 %v1025_v14 }
  0x40   : > { %960 = vmatprep.subr.bf16.mxu1 %v1026_v15 }
  0x46   : > { %941 = vmatpush3.bf16.xpose.msra.mxu0 %v1025_v14  ;;  %v254_v14 = vld [vmem:[%s1144_s26 + $0x18] sm:$0xff] }
  0x47   : > { %961 = vmatpush3.bf16.xpose.msra.mxu1 %v1026_v15  ;;  %942 = vmatprep.subr.bf16.mxu0 %v1027_v16 }
  0x48   : > { %962 = vmatprep.subr.bf16.mxu1 %v1028_v17 }
  0x4e   : > { %943 = vmatpush3.bf16.xpose.msra.mxu0 %v1027_v16  ;;  %v247_v16 = vld [vmem:[%s1139_s23] sm:$0xff] }
  0x4f   : > { %963 = vmatpush3.bf16.xpose.msra.mxu1 %v1028_v17  ;;  %968 = vmatprep.subr.bf16.mxu0 %v1014_v2 }
  0x55   : > { %945 = vmatmul.mubr.bf16.vlgmr.msra.gmra.mrb[0].mxu0 %v1030_v18 }
  0x56   : > { %965 = vmatmul.mubr.bf16.vlgmr.msra.gmra.mrb[0].mxu1 %v1030_v18  ;;  %969 = vmatpush3.bf16.xpose.msra.mxu0 %v1014_v2 }
  0x57   : > { %970 = vmatprep.subr.bf16.mxu0 %v1016_v4  ;;  %984 = vmatprep.mubr.bf16.mxu0 %v1031_v19 }
  0x5e   : > { %971 = vmatpush3.bf16.xpose.msra.mxu0 %v1016_v4 }
  0x5f   : > { %972 = vmatprep.subr.bf16.mxu0 %v1018_v6 }
  0x66   : > { %973 = vmatpush3.bf16.xpose.msra.mxu0 %v1018_v6 }
  0x67   : > { %974 = vmatprep.subr.bf16.mxu0 %v1020_v9 }
  0x6e   : > { %975 = vmatpush3.bf16.xpose.msra.mxu0 %v1020_v9  ;;  %v252_v9 = vld [vmem:[%s1144_s26 + $0x8] sm:$0xff] }
  0x6f   : > { %976 = vmatprep.subr.bf16.mxu0 %v1022_v11  ;;  %v637_v12 = vmul.f32 %v252_v9, %v248_v8 }
  0x76   : > { %977 = vmatpush3.bf16.xpose.msra.mxu0 %v1022_v11 }
  0x77   : > { %978 = vmatprep.subr.bf16.mxu0 %v1024_v13 }
  0x7e   : > { %979 = vmatpush3.bf16.xpose.msra.mxu0 %v1024_v13  ;;  %v250_v13 = vld [vmem:[%s1139_s23 + $0x18] sm:$0xff]  ;;  %s652_s23 = sld [smem:[#allocation4]] }
  0x7f   : > { %980 = vmatprep.subr.bf16.mxu0 %v1026_v15  ;;  %v639_v18 = vmul.f32 %v254_v14, %v250_v13 }
  0x86   : > { %981 = vmatpush3.bf16.xpose.msra.mxu0 %v1026_v15 }
  0x87   : > { %982 = vmatprep.subr.bf16.mxu0 %v1028_v17 }
  0x8e   : > { %983 = vmatpush3.bf16.xpose.msra.mxu0 %v1028_v17  ;;  %v251_v17 = vld [vmem:[%s1144_s26] sm:$0xff]  ;;  %s890_s26 = sld [smem:[#allocation4 + $0x1]] }
  0x95   : > { %985 = vmatmul.mubr.bf16.vlgmr.msra.gmra.mrb[4].mxu0 %v1032_v20  ;;  %v636_v20 = vmul.f32 %v251_v17, %v247_v16 }
 0x128   : > { %v946_v29 = vpop.f32.mrb[0].mxu0 }
 0x129   : > { %v436_v30 = vmul.f32 2.0, %v946_v29  ;;  %v966_v31 = vpop.f32.mrb[0].mxu1  ;;  %v419_v32 = vpop.f32.mrb[1].mxu0 }
 0x12a   : > { %v541_v35 = vmul.f32 2.0, %v966_v31  ;;  %v524_v36 = vpop.f32.mrb[1].mxu1  ;;  %v947_v37 = vpop.f32.mrb[2].mxu0  ;;  %v434_v46 = vmul.f32 2.0, %v419_v32 }
 0x12b   : > { %v539_v38 = vmul.f32 2.0, %v524_v36  ;;  %v967_v40 = vpop.f32.mrb[2].mxu1  ;;  %v422_v42 = vpop.f32.mrb[3].mxu0  ;;  %v440_v45 = vadd.f32 %v436_v30, %v1222_v34  ;;  %v437_v59 = vmul.f32 2.0, %v947_v37 }
 0x12c   : > { %v624_v43 = vmul.f32 1.442695, %v541_v35  ;;  %v527_v44 = vpop.f32.mrb[3].mxu1  ;;  %v542_v51 = vmul.f32 2.0, %v967_v40  ;;  %v438_v53 = vadd.f32 %v434_v46, %v1229_v48  ;;  %v435_v54 = vmul.f32 2.0, %v422_v42 }
 0x12d   : > { %v540_v47 = vmul.f32 2.0, %v527_v44  ;;  %v620_v49 = vmul.f32 1.442695, %v539_v38  ;;  %v616_v55 = vmul.f32 1.442695, %v440_v45  ;;  %v441_v63 = vadd.f32 %v437_v59, %v324_v61 }
 0x12e   : > { %1033 = vpow2.f32 %v624_v43  ;;  %v626_v57 = vmul.f32 1.442695, %v542_v51  ;;  %v612_v58 = vmul.f32 1.442695, %v438_v53  ;;  %v439_v60 = vadd.f32 %v435_v54, %v1236_v56 }
 0x12f   : > { %v622_v52 = vmul.f32 1.442695, %v540_v47  ;;  %1035 = vpow2.f32 %v620_v49  ;;  %v618_v2 = vmul.f32 1.442695, %v441_v63 }
 0x130   : > { %v614_v0 = vmul.f32 1.442695, %v439_v60 }
 0x131   : > { %1037 = vpow2.f32 %v622_v52 }
 0x132   : > { %1039 = vpow2.f32 %v616_v55 }
 0x133   : > { %1041 = vpow2.f32 %v626_v57 }
 0x134   : > { %1043 = vpow2.f32 %v612_v58 }
 0x135   : > { %1045 = vpow2.f32 %v614_v0  ;;  %v733_v0 = vld [vmem:[#allocation3] sm:$0x1] }
 0x136   : > { %1047 = vpow2.f32 %v618_v2 }
 0x138   : > { %v1034_v62 = vpop.eup %1033 }
 0x139   : > { %689 = vadd.xlane.f32.xlu1 %v1034_v62  ;;  %v1036_v1 = vpop.eup %1035 }
 0x13b   : > { %v1038_v3 = vpop.eup %1037 }
 0x13c   : > { %v1040_v4 = vpop.eup %1039  ;;  %v734_v5 = vadd.f32 %v1038_v3, %v1036_v1 }
 0x13d   : > { %685 = vadd.xlane.f32.xlu1 %v1036_v1  ;;  %681 = vadd.xlane.f32.xlu0 %v1040_v4  ;;  %v1042_v7 = vpop.eup %1041 }
 0x13e   : > { %v735_v6 = vadd.f32 %v1034_v62, %v734_v5  ;;  %v1044_v10 = vpop.eup %1043 }
 0x13f   : > { %v1046_v15 = vpop.eup %1045 }
 0x140   : > { %v736_v11 = vadd.f32 %v1042_v7, %v735_v6  ;;  %v1048_v19 = vpop.eup %1047 }
 0x141   : > { %687 = vadd.xlane.f32.xlu1 %v1038_v3  ;;  %677 = vadd.xlane.f32.xlu0 %v1044_v10 }
 0x142   : > { %v737_v45 = vrot.slane %v736_v11, 4 }
 0x144   : > { %v738_v49 = vadd.f32 %v737_v45, %v736_v11 }
 0x145   : > { %691 = vadd.xlane.f32.xlu1 %v1042_v7  ;;  %679 = vadd.xlane.f32.xlu0 %v1046_v15 }
 0x146   : > { %v739_v53 = vrot.slane %v738_v49, 2 }
 0x148   : > { %v740_v57 = vadd.f32 %v739_v53, %v738_v49 }
 0x149   : > { %642 = vadd.xlane.f32.xlu1 %v637_v12  ;;  %683 = vadd.xlane.f32.xlu0 %v1048_v19 }
 0x14a   : > { %v741_v59 = vrot.slane %v740_v57, 1 }
 0x14c   : > { %v742_v62 = vadd.f32 %v741_v59, %v740_v57 }
 0x14d   : > { %646 = vadd.xlane.f32.xlu1 %v639_v18  ;;  %640 = vadd.xlane.f32.xlu0 %v636_v20 }
 0x151   : > { %644 = vadd.xlane.f32.xlu0 %v638_v23 }
 0x168   : > { %v986_v24 = vpop.f32.mrb[4].mxu0 }
 0x169   : > { %v606_v28 = vmul.f32 2.0, %v986_v24  ;;  %v589_v29 = vpop.f32.mrb[5].mxu0 }
 0x16a   : > { %v604_v30 = vmul.f32 2.0, %v589_v29  ;;  %v987_v31 = vpop.f32.mrb[6].mxu0 }
 0x16b   : > { %v610_v32 = vadd.f32 %v606_v28, %v1222_v34  ;;  %v607_v33 = vmul.f32 2.0, %v987_v31  ;;  %v592_v35 = vpop.f32.mrb[7].mxu0 }
 0x16c   : > { %v608_v36 = vadd.f32 %v604_v30, %v1229_v48  ;;  %v605_v37 = vmul.f32 2.0, %v592_v35 }
 0x16d   : > { %v632_v38 = vmul.f32 1.442695, %v610_v32  ;;  %v611_v39 = vadd.f32 %v607_v33, %v324_v61 }
 0x16e   : > { %v628_v40 = vmul.f32 1.442695, %v608_v36  ;;  %v609_v42 = vadd.f32 %v605_v37, %v1236_v56 }
 0x16f   : > { %v634_v43 = vmul.f32 1.442695, %v611_v39 }
 0x170   : > { %1049 = vpow2.f32 %v628_v40  ;;  %v630_v44 = vmul.f32 1.442695, %v609_v42 }
 0x171   : > { %1051 = vpow2.f32 %v632_v38 }
 0x172   : > { %1053 = vpow2.f32 %v630_v44 }
 0x173   : > { %1055 = vpow2.f32 %v634_v43 }
 0x17a   : > { %v1050_v46 = vpop.eup %1049 }
 0x17b   : > { %v1052_v47 = vpop.eup %1051 }
 0x17c   : > { %v1054_v34 = vpop.eup %1053 }
 0x17d   : > { %v743_v51 = vadd.f32 %v1054_v34, %v1050_v46  ;;  %v1056_v52 = vpop.eup %1055 }
 0x17f   : > { %v744_v48 = vadd.f32 %v1052_v47, %v743_v51 }
 0x181   : > { %v745_v54 = vadd.f32 %v1056_v52, %v744_v48 }
 0x183   : > { %v746_v55 = vrot.slane %v745_v54, 4 }
 0x185   : > { %v747_v58 = vadd.f32 %v746_v55, %v745_v54 }
 0x187   : > { %v748_v56 = vrot.slane %v747_v58, 2 }
 0x189   : > { %v749_v60 = vadd.f32 %v748_v56, %v747_v58 }
 0x18b   : > { %v750_v61 = vrot.slane %v749_v60, 1 }
 0x18d   : > { %v751_v63 = vadd.f32 %v750_v61, %v749_v60 }
 0x18f   : > { %v752_v1 = vadd.f32 %v751_v63, %v742_v62 }
 0x191   : > { %v753_v2 = vadd.f32 %v752_v1, %v733_v0 }
 0x193   : > { %754 = vst [vmem:[#allocation3] sm:$0x1] %v753_v2 }
 0x1c6   : > { %v690_v3 = vpop.xlane.xlu1 %689 }
 0x1ca   : > { %v686_v4 = vpop.xlane.xlu1 %685  ;;  %v682_v5 = vpop.xlane.xlu0 %681 }
 0x1cb   : > { %v695_v6 = vadd.f32 %v690_v3, %v682_v5 }
 0x1cd   : > { %v888_v8 = vadd.f32 -224.0, %v695_v6 }
 0x1ce   : > { %v688_v7 = vpop.xlane.xlu1 %687  ;;  %v678_v9 = vpop.xlane.xlu0 %677 }
 0x1cf   : > { %v693_v10 = vadd.f32 %v686_v4, %v678_v9  ;;  %1057 = vlog2.f32 %v888_v8  ;;  %v760_v8 = vld [vmem:[#allocation3] sm:$0x1] (!%p891_p5) }
 0x1d0   : > { %v892_v9 = vadd.f32 (!%p891_p5), -224.0, %v760_v8 }
 0x1d1   : > { %v886_v12 = vadd.f32 -224.0, %v693_v10 }
 0x1d2   : > { %v692_v11 = vpop.xlane.xlu1 %691  ;;  %v680_v13 = vpop.xlane.xlu0 %679 }
 0x1d3   : > { %1059 = vlog2.f32 %v886_v12  ;;  %v694_v14 = vadd.f32 %v688_v7, %v680_v13 }
 0x1d5   : > { %v887_v16 = vadd.f32 -224.0, %v694_v14 }
 0x1d6   : > { %v643_v15 = vpop.xlane.xlu1 %642  ;;  %v684_v18 = vpop.xlane.xlu0 %683 }
 0x1d7   : > { %v649_v17 = vmul.f32 2.0, %v643_v15  ;;  %1061 = vlog2.f32 %v887_v16  ;;  %v696_v19 = vadd.f32 %v692_v11, %v684_v18 }
 0x1d9   : > { %v889_v21 = vadd.f32 -224.0, %v696_v19  ;;  %v654_v22 = vsel %vm318_vm4, %v649_v17, 0.0  ;;  %v1058_v29 = vpop.eup %1057 }
 0x1da   : > { %v647_v20 = vpop.xlane.xlu1 %646  ;;  %v641_v23 = vpop.xlane.xlu0 %640  ;;  %v659_v30 = vsel %vm657_vm6, %v654_v22, 0.0  ;;  %v707_v40 = vmul.f32 0.6931472, %v1058_v29 }
 0x1db   : > { %1063 = vlog2.f32 %v889_v21  ;;  %v648_v24 = vmul.f32 2.0, %v641_v23  ;;  %v651_v28 = vmul.f32 2.0, %v647_v20 }
 0x1dc   : > { %v712_v51 = vsel %vm319_vm8, %v707_v40, 0.0  ;;  %1065 = vlog2.f32 (!%p891_p5), %v892_v9 }
 0x1dd   : > { %v1060_v31 = vpop.eup %1059  ;;  %v653_v32 = vsel %vm317_vm5, %v648_v24, 0.0  ;;  %v656_v39 = vsel %vm320_vm7, %v651_v28, 0.0  ;;  %v717_v27 = vsel %vm657_vm6, %v712_v51, 0.0 }
 0x1de   : > { %v703_v33 = vmul.f32 0.6931472, %v1060_v31  ;;  %v658_v35 = vsel %vm657_vm6, %v653_v32, 0.0  ;;  %v645_v36 = vpop.xlane.xlu0 %644  ;;  %v663_v47 = vsel %vm657_vm6, %v656_v39, 0.0 }
 0x1df   : > { %v660_v37 = vadd.f32 %v659_v30, %v658_v35  ;;  %v650_v38 = vmul.f32 2.0, %v645_v36 }
 0x1e0   : > { %v710_v45 = vsel %vm317_vm5, %v703_v33, 0.0 }
 0x1e1   : > { %v1062_v42 = vpop.eup %1061  ;;  %v655_v43 = vsel %vm319_vm8, %v650_v38, 0.0  ;;  %v714_v48 = vsel %vm657_vm6, %v710_v45, 0.0 }
 0x1e2   : > { %v705_v44 = vmul.f32 0.6931472, %v1062_v42  ;;  %v661_v46 = vsel %vm657_vm6, %v655_v43, 0.0 }
 0x1e3   : > { %v662_v34 = vadd.f32 %v661_v46, %v660_v37 }
 0x1e4   : > { %v711_v49 = vsel %vm318_vm4, %v705_v44, 0.0 }
 0x1e5   : > { %v1064_v52 = vpop.eup %1063  ;;  %v715_v25 = vsel %vm657_vm6, %v711_v49, 0.0  ;;  %v664_v53 = vadd.f32 %v663_v47, %v662_v34 }
 0x1e6   : > { %v709_v54 = vmul.f32 0.6931472, %v1064_v52  ;;  %v716_v55 = vadd.f32 %v715_v25, %v714_v48  ;;  %v1066_v10 = vpop.eup (!%p891_p5), %1065 }
 0x1e7   : > { %665 = vadd.xlane.f32.xlu0 %v664_v53  ;;  %v763_v11 = vmul.f32 (!%p891_p5), 0.6931472, %v1066_v10 }
 0x1e8   : > { %v713_v57 = vsel %vm320_vm7, %v709_v54, 0.0  ;;  %v718_v58 = vadd.f32 %v717_v27, %v716_v55 }
 0x1e9   : > { %v719_v56 = vsel %vm657_vm6, %v713_v57, 0.0  ;;  %v764_v12 = vsel (!%p891_p5), %vm759_vm9, %v763_v11, 0.0 }
 0x1ea   : > { %v720_v41 = vadd.f32 %v719_v56, %v718_v58  ;;  %v766_v13 = vsel (!%p891_p5), %vm765_vm10, %v764_v12, 0.0 }
 0x1eb   : > { %767 = vadd.xlane.f32.xlu0 (!%p891_p5), %v766_v13 }
 0x1ec   : > { %721 = vadd.xlane.f32.xlu1 %v720_v41 }
 0x274   : > { %v666_v59 = vpop.xlane.xlu0 %665 }
 0x275   : > { %v667_v60 = vrot.slane %v666_v59, 4 }
 0x277   : > { %v668_v61 = vadd.f32 %v667_v60, %v666_v59 }
 0x278   : > { %v768_v14 = vpop.xlane.xlu0 (!%p891_p5), %767 }
 0x279   : > { %v669_v62 = vrot.slane %v668_v61, 2  ;;  %v722_v63 = vpop.xlane.xlu1 %721  ;;  %v769_v15 = vrot.slane (!%p891_p5), %v768_v14, 4 }
 0x27a   : > { %v723_v0 = vrot.slane %v722_v63, 4 }
 0x27b   : > { %v670_v1 = vadd.f32 %v669_v62, %v668_v61  ;;  %v770_v16 = vadd.f32 (!%p891_p5), %v769_v15, %v768_v14 }
 0x27c   : > { %v724_v2 = vadd.f32 %v723_v0, %v722_v63 }
 0x27d   : > { %v671_v3 = vrot.slane %v670_v1, 1  ;;  %v771_v17 = vrot.slane (!%p891_p5), %v770_v16, 2 }
 0x27e   : > { %v725_v4 = vrot.slane %v724_v2, 2 }
 0x27f   : > { %v672_v5 = vadd.f32 %v671_v3, %v670_v1  ;;  %v772_v18 = vadd.f32 (!%p891_p5), %v771_v17, %v770_v16 }
 0x280   : > { %v726_v6 = vadd.f32 %v725_v4, %v724_v2 }
 0x281   : > { %988 = vpush %v672_v5  ;;  %v773_v19 = vrot.slane (!%p891_p5), %v772_v18, 1 }
 0x282   : > { %v727_v50 = vrot.slane %v726_v6, 1 }
 0x283   : > { %v774_v20 = vadd.f32 (!%p891_p5), %v773_v19, %v772_v18 }
 0x284   : > { %v728_v7 = vadd.f32 %v727_v50, %v726_v6 }
 0x286   : > { %990 = vpush %v728_v7 }
 0x287   : > { %992 = vpush (!%p891_p5), %v774_v20 }
 0x2b2   : > { %s989_s11 = spop %988 }
 0x2b3   : > { %s674_s21 = sadd.f32 %s989_s11, %s652_s23 }
 0x2b4   : > { %758 = sbr.rel (%p891_p5) target bundleno = 716 (0x2cc), region = 48 }
 0x2b5   : > { %676 = sst [smem:[#allocation4]] %s674_s21 }
 0x2b6   : > { %s783_s30 = sld [smem:[#allocation4]] (!%p891_p5) }
 0x2b7   : > { %s991_s27 = spop %990 }
 0x2b8   : > { %s730_s28 = sadd.f32 %s991_s27, %s890_s26  ;;  %s993_s7 = spop (!%p891_p5), %992 }
 0x2b9   : > { %s778_s8 = smul.f32 (!%p891_p5), 0.0625, %s993_s7 }
 0x2ba   : > { %732 = sst [smem:[#allocation4 + $0x1]] %s730_s28 }
 0x2bb   : > { %s893_s29 = sld [smem:[#allocation4 + $0x1]] }
 0x2bc   : > { %s786_s9 = smul.f32 0.0625, %s783_s30 }
 0x2c1   : > { %s782_s6 = smul.f32 0.0625, %s893_s29 }
 0x2c3   : > { %s787_s10 = sadd.f32 %s782_s6, %s778_s8 }
 0x2c5   : > { %s788_s12 = smul.f32 0.5, %s787_s10 }
 0x2c7   : > { %s789_s13 = ssub.f32 %s786_s9, %s788_s12 }
 0x2c9   : > { %s790_s14 = ssub.f32 0.0, %s789_s13 }
 0x2cb   : > { %792 = sst [smem:[#allocation5]] %s790_s14 }
 0x2cc PF: > { %p998_p6 = scmp.eq.s32.totalorder %s1131_s19, 3  ;;  %s1067_s17 = scalar_lea.hbm %s1299_s5, 16 }
 0x2cd   : > { %p1068_p7 = scmp.ne.s32.totalorder %s1299_s5, %s1067_s17  ;;  %p1073_p10 = scmp.lt.u32.totalorder %s1067_s17, %s1299_s5 }
 0x2cf   : > { %p1069_p8 = pnand %p1068_p7, %p998_p6 }
 0x2d1   : > { %p1070_p9 = pneg %p1069_p8 }
 0x2d3   : > { %p1075_p11 = pnand %p1073_p10, %p1070_p9 }
 0x2d5   : > { %1078 = shalt.err (!%p1075_p11)
}
 0x2d6   : > { %s1094_s25 = smov [#allocation5]  }
 0x2d7   : > { %995 = dma.smem_to_hbm (%p998_p6), %s1094_s25, 16, %s1299_s5, [#allocation6]  }
 0x2d8   : > { %1084 = dma.done.wait (%p998_p6), [#allocation6], 16  }
 0x2d9   : > { %1086 = vsyncadd (%p998_p6), [#allocation6], 4294967280 }
 0x2da   : > { %806 = sfence }
 0x2db PF: > { %s16_s18 = sadd.s32 1, %s1089_s18  }
 0x2dc   : > { %p13_p12 = scmp.ge.s32.totalorder %s16_s18, 6  }
 0x2de   :  { %15 = sbr.rel (!%p13_p12) target bundleno = 1 (0x1), region = 85 }
 0x2e5   :  { %812 = vsyncpa [#allocation6], 1 }
 0x2e6   :  { %814 = vsyncpa [#allocation6 + $0x1], 1 }

</bundles_post_ra>
